<compile_context>
chip_gen: v6e
topology: v6e:2x2x1
jax: 0.10.0
libtpu: 0.0.40
codegen_flags: <defaults>
</compile_context>

<pallas_src>
import functools

import jax
import jax.numpy as jnp
from jax.experimental import pallas as pl
from jax.experimental.pallas import tpu as pltpu


# ----------------------------------------------------------------------------
# Kernel
# ----------------------------------------------------------------------------
def _vae_encoder2_kernel(
    x_ref, eps_ref, w_ref, b_ref,          # inputs
    head1_ref, z1_ref, head2_ref,          # outputs
    *, k: int, offs, layer_dims):
    """Layer order in the packed slabs:
         0: FC_enc1        (D_in, H1)
         1: FC_enc2        (H1,  H1)
         2: [mean1|var1]   (H1,  2*L1)
         3: FC_enc3        (L1,  H2)       (applied twice, as in PyTorch)
         4: [mean2|var2]   (H2,  2*L2)
    """
    f32 = jnp.float32

    def linear(idx, x):
        r0 = offs[idx]
        n_in, n_out = layer_dims[idx]
        w = w_ref[r0:r0 + n_in, :n_out]          # static, sublane-aligned slice
        b = b_ref[idx:idx + 1, :n_out]           # (1, n_out) -> broadcasts over rows
        return jnp.dot(x, w, preferred_element_type=f32) + b

    # ---- stage 1: shared over the k importance samples -----------------
    x = x_ref[...]                               # (B, D_in)
    h1 = jnp.tanh(linear(0, x))                  # (B, H1)
    h2 = jnp.tanh(linear(1, h1))                 # (B, H1)
    head1 = linear(2, h2)                        # (B, 2*L1)  = [mean1 | logvar1]
    head1_ref[...] = head1

    B = x_ref.shape[0]
    Bk = eps_ref.shape[0]                        # B * k
    L1 = layer_dims[2][1] // 2

    # Broadcast head1 row b -> rows [b*k, (b+1)*k) with an exact 0/1 selection
    # matmul (avoids any in-kernel sublane reshape; 1.0/0.0 products are exact).
    r = jax.lax.broadcasted_iota(jnp.int32, (Bk, B), 0)
    c = jax.lax.broadcasted_iota(jnp.int32, (Bk, B), 1)
    sel = jnp.logical_and(r >= c * k, r < (c + 1) * k).astype(f32)   # (Bk, B)
    head1_bk = jnp.dot(sel, head1, preferred_element_type=f32)       # (Bk, 2*L1)

    mean_bk = head1_bk[:, :L1]
    std_bk = jnp.exp(0.5 * head1_bk[:, L1:2 * L1])

    # ---- reparameterization + stage 2, batched over all k*B rows --------
    z = mean_bk + std_bk * eps_ref[...]          # (Bk, L1)
    z1_ref[...] = z

    h3 = jnp.tanh(linear(3, z))                  # (Bk, H2)
    h4 = jnp.tanh(linear(3, h3))                 # FC_enc3 applied twice (PyTorch forward)
    head2_ref[...] = linear(4, h4)               # (Bk, 2*L2) = [mean2 | logvar2]


# ----------------------------------------------------------------------------
# Parameter packing: all weights into one slab, all biases into one slab.
# ----------------------------------------------------------------------------
def _round_up(n, m):
    return (n + m - 1) // m * m


def pack_params(p):
    """Returns (wslab, bslab, meta); meta is static (offsets, layer_dims, wmax)."""
    weights = [
        p["w1"],
        p["w2"],
        jnp.concatenate([p["wm1"], p["wv1"]], axis=1),
        p["w3"],
        jnp.concatenate([p["wm2"], p["wv2"]], axis=1),
    ]
    biases = [
        p["b1"],
        p["b2"],
        jnp.concatenate([p["bm1"], p["bv1"]], axis=1),
        p["b3"],
        jnp.concatenate([p["bm2"], p["bv2"]], axis=1),
    ]
    wmax = max(int(w.shape[1]) for w in weights)

    blocks, offs = [], []
    row = 0
    for w in weights:
        n_in, n_out = int(w.shape[0]), int(w.shape[1])
        rows_p = _round_up(n_in, 8)              # keep slices sublane-aligned
        blk = jnp.zeros((rows_p, wmax), jnp.float32).at[:n_in, :n_out].set(w)
        blocks.append(blk)
        offs.append(row)
        row += rows_p
    wslab = jnp.concatenate(blocks, axis=0)

    brows = []
    for b in biases:
        n_out = int(b.shape[1])
        brows.append(jnp.zeros((1, wmax), jnp.float32).at[:, :n_out].set(b))
    bslab = jnp.concatenate(brows, axis=0)

    layer_dims = tuple((int(w.shape[0]), int(w.shape[1])) for w in weights)
    meta = (tuple(offs), layer_dims, wmax)
    return wslab, bslab, meta


# ----------------------------------------------------------------------------
# Wrapper (only free reshapes / slices around the pallas_call)
# ----------------------------------------------------------------------------
@functools.partial(jax.jit, static_argnames=("meta", "k"))
def vae_encoder2_forward(x, eps, wslab, bslab, *, meta, k: int):
    """x: (B, input_dim) f32;  eps: (B, k, latent_dim_1) f32 (the randn noise)."""
    offs, layer_dims, _ = meta
    B = x.shape[0]
    L1 = layer_dims[2][1] // 2
    L2 = layer_dims[4][1] // 2
    # The PyTorch forward applies FC_enc3 twice -> requires hidden_dim_2 == latent_dim_1.
    assert layer_dims[3][0] == layer_dims[3][1], (
        "FC_enc3 is applied twice in forward(); hidden_dim_2 must equal latent_dim_1")
    Bk = B * k

    eps2 = eps.reshape(Bk, L1)                   # contiguous reshape (no transpose)

    out_shapes = (
        jax.ShapeDtypeStruct((B, 2 * L1), jnp.float32),    # [mean1 | logvar1]
        jax.ShapeDtypeStruct((Bk, L1), jnp.float32),       # z1 (B-major rows: b*k + j)
        jax.ShapeDtypeStruct((Bk, 2 * L2), jnp.float32),   # [mean2 | logvar2]
    )

    kernel = functools.partial(
        _vae_encoder2_kernel, k=k, offs=offs, layer_dims=layer_dims)

    vmem = pl.BlockSpec(memory_space=pltpu.MemorySpace.VMEM)
    head1, z1_flat, head2_flat = pl.pallas_call(
        kernel,
        out_shape=out_shapes,
        in_specs=[vmem, vmem, vmem, vmem],
        out_specs=(vmem, vmem, vmem),
    )(x, eps2, wslab, bslab)

    mean1 = head1[:, :L1]
    logvar1 = head1[:, L1:]
    z1 = z1_flat.reshape(B, k, L1)
    head2 = head2_flat.reshape(B, k, 2 * L2)
    mean2 = head2[..., :L2]
    logvar2 = head2[..., L2:]
    return mean1, logvar1, z1, mean2, logvar2


# ----------------------------------------------------------------------------
# Deterministic parameter construction (mirrors nn.Linear shapes, pre-transposed)
# ----------------------------------------------------------------------------
def make_params(key, input_dim, hidden_dim_1, latent_dim_1, hidden_dim_2, latent_dim_2):
    def linear(key, fan_in, fan_out):
        kw, kb = jax.random.split(key)
        scale = 1.0 / jnp.sqrt(jnp.float32(fan_in))
        w = jax.random.normal(kw, (fan_in, fan_out), jnp.float32) * scale
        b = jax.random.normal(kb, (1, fan_out), jnp.float32) * scale
        return w, b

    keys = jax.random.split(key, 6)
    p = {}
    p["w1"], p["b1"] = linear(keys[0], input_dim, hidden_dim_1)       # FC_enc1
    p["w2"], p["b2"] = linear(keys[1], hidden_dim_1, hidden_dim_1)    # FC_enc2
    p["wm1"], p["bm1"] = linear(keys[2], hidden_dim_1, latent_dim_1)  # FC_mean1
    p["wv1"], p["bv1"] = linear(keys[3], hidden_dim_1, latent_dim_1)  # FC_var1
    p["w3"], p["b3"] = linear(keys[4], latent_dim_1, hidden_dim_2)    # FC_enc3
    # FC_enc4 exists in __init__ but is never used in forward -> omitted.
    km2, kv2 = jax.random.split(keys[5])
    p["wm2"], p["bm2"] = linear(km2, hidden_dim_2, latent_dim_2)      # FC_mean2
    p["wv2"], p["bv2"] = linear(kv2, hidden_dim_2, latent_dim_2)      # FC_var2
    return p


# Pure-JAX reference (same math, same eps) for the sanity check.
def reference_forward(x, eps, p, *, k):
    act = jnp.tanh
    h1 = act(x @ p["w1"] + p["b1"])
    h2 = act(h1 @ p["w2"] + p["b2"])
    mean1 = h2 @ p["wm1"] + p["bm1"]
    logvar1 = h2 @ p["wv1"] + p["bv1"]
    z1 = mean1[:, None, :] + jnp.exp(0.5 * logvar1)[:, None, :] * eps
    h3 = act(z1 @ p["w3"] + p["b3"])
    h4 = act(h3 @ p["w3"] + p["b3"])
    mean2 = h4 @ p["wm2"] + p["bm2"]
    logvar2 = h4 @ p["wv2"] + p["bv2"]
    return mean1, logvar1, z1, mean2, logvar2


if __name__ == "__main__":
    # Small, self-consistent shapes (FC_enc3 applied twice -> HIDDEN_2 == LATENT_1).
    B = 8
    INPUT_DIM = 32
    HIDDEN_1 = 64
    LATENT_1 = 32
    HIDDEN_2 = 32
    LATENT_2 = 16
    K = 2

    root = jax.random.PRNGKey(0)
    k_param, k_x, k_eps = jax.random.split(root, 3)

    params = make_params(k_param, INPUT_DIM, HIDDEN_1, LATENT_1, HIDDEN_2, LATENT_2)
    wslab, bslab, meta = pack_params(params)     # packed once at setup time

    x = jax.random.normal(k_x, (B, INPUT_DIM), jnp.float32)
    # torch.randn_like(mean_ki) equivalent, drawn outside the kernel for determinism.
    eps = jax.random.normal(k_eps, (B, K, LATENT_1), jnp.float32)

    outs = vae_encoder2_forward(x, eps, wslab, bslab, meta=meta, k=K)
    outs = jax.block_until_ready(outs)

    refs = reference_forward(x, eps, params, k=K)
    for got, want in zip(outs, refs):
        assert got.shape == want.shape, (got.shape, want.shape)
        assert jnp.allclose(got, want, atol=2e-3, rtol=2e-3), \
            float(jnp.max(jnp.abs(got - want)))

    print("KERNEL_OK")
</pallas_src>

<mosaic_0001>
module attributes {stable_mosaic.version = 11 : i64} {
  func.func @_vae_encoder2_kernel(%arg0: memref<8x32xf32, #tpu.memory_space<vmem>>, %arg1: memref<16x32xf32, #tpu.memory_space<vmem>>, %arg2: memref<224x64xf32, #tpu.memory_space<vmem>>, %arg3: memref<5x64xf32, #tpu.memory_space<vmem>>, %arg4: memref<8x64xf32, #tpu.memory_space<vmem>>, %arg5: memref<16x32xf32, #tpu.memory_space<vmem>>, %arg6: memref<16x32xf32, #tpu.memory_space<vmem>>) attributes {dimension_semantics = [], scalar_prefetch = 0 : i64, scratch_operands = 0 : i64, tpu.core_type = #tpu.core_type<tc>} {
    %c0 = arith.constant 0 : index
    %c0_0 = arith.constant 0 : index
    %0 = vector.load %arg0[%c0, %c0_0] : memref<8x32xf32, #tpu.memory_space<vmem>>, vector<8x32xf32>
    %c0_1 = arith.constant 0 : index
    %c0_2 = arith.constant 0 : index
    %1 = vector.load %arg2[%c0_1, %c0_2] : memref<224x64xf32, #tpu.memory_space<vmem>>, vector<32x64xf32>
    %c0_3 = arith.constant 0 : index
    %c0_4 = arith.constant 0 : index
    %2 = vector.load %arg3[%c0_3, %c0_4] : memref<5x64xf32, #tpu.memory_space<vmem>>, vector<1x64xf32>
    %cst = arith.constant dense<0.000000e+00> : vector<8x64xf32>
    %3 = tpu.matmul %0, %1, %cst {dimension_numbers = #tpu.dot_dimension_numbers<[1], [0], [0], [1], [0, 0, 1, 1], [], []>} : vector<8x32xf32>, vector<32x64xf32>, vector<8x64xf32> -> vector<8x64xf32>
    %4 = vector.broadcast %2 : vector<1x64xf32> to vector<8x64xf32>
    %5 = arith.addf %3, %4 : vector<8x64xf32>
    %6 = math.tanh %5 : vector<8x64xf32>
    %c32 = arith.constant 32 : index
    %c0_5 = arith.constant 0 : index
    %7 = vector.load %arg2[%c32, %c0_5] : memref<224x64xf32, #tpu.memory_space<vmem>>, vector<64x64xf32>
    %c1 = arith.constant 1 : index
    %c0_6 = arith.constant 0 : index
    %8 = vector.load %arg3[%c1, %c0_6] : memref<5x64xf32, #tpu.memory_space<vmem>>, vector<1x64xf32>
    %cst_7 = arith.constant dense<0.000000e+00> : vector<8x64xf32>
    %9 = tpu.matmul %6, %7, %cst_7 {dimension_numbers = #tpu.dot_dimension_numbers<[1], [0], [0], [1], [0, 0, 1, 1], [], []>} : vector<8x64xf32>, vector<64x64xf32>, vector<8x64xf32> -> vector<8x64xf32>
    %10 = vector.broadcast %8 : vector<1x64xf32> to vector<8x64xf32>
    %11 = arith.addf %9, %10 : vector<8x64xf32>
    %12 = math.tanh %11 : vector<8x64xf32>
    %c96 = arith.constant 96 : index
    %c0_8 = arith.constant 0 : index
    %13 = vector.load %arg2[%c96, %c0_8] : memref<224x64xf32, #tpu.memory_space<vmem>>, vector<64x64xf32>
    %c2 = arith.constant 2 : index
    %c0_9 = arith.constant 0 : index
    %14 = vector.load %arg3[%c2, %c0_9] : memref<5x64xf32, #tpu.memory_space<vmem>>, vector<1x64xf32>
    %cst_10 = arith.constant dense<0.000000e+00> : vector<8x64xf32>
    %15 = tpu.matmul %12, %13, %cst_10 {dimension_numbers = #tpu.dot_dimension_numbers<[1], [0], [0], [1], [0, 0, 1, 1], [], []>} : vector<8x64xf32>, vector<64x64xf32>, vector<8x64xf32> -> vector<8x64xf32>
    %16 = vector.broadcast %14 : vector<1x64xf32> to vector<8x64xf32>
    %17 = arith.addf %15, %16 : vector<8x64xf32>
    %c0_11 = arith.constant 0 : index
    %c0_12 = arith.constant 0 : index
    %18 = vector.load %arg4[%c0_11, %c0_12] : memref<8x64xf32, #tpu.memory_space<vmem>>, vector<8x64xf32>
    tpu.vector_store %arg4[%c0_11, %c0_12], %17 {strides = array<i32>} : memref<8x64xf32, #tpu.memory_space<vmem>>, vector<8x64xf32>,
    %19 = tpu.iota {dimensions = array<i32: 0>} : vector<16x8xi32>
    %20 = tpu.iota {dimensions = array<i32: 1>} : vector<16x8xi32>
    %c2_i32 = arith.constant 2 : i32
    %21 = vector.broadcast %c2_i32 : i32 to vector<16x8xi32>
    %22 = arith.muli %20, %21 : vector<16x8xi32>
    %23 = arith.cmpi sge, %19, %22 : vector<16x8xi32>
    %c1_i32 = arith.constant 1 : i32
    %24 = vector.broadcast %c1_i32 : i32 to vector<16x8xi32>
    %25 = arith.addi %20, %24 : vector<16x8xi32>
    %c2_i32_13 = arith.constant 2 : i32
    %26 = vector.broadcast %c2_i32_13 : i32 to vector<16x8xi32>
    %27 = arith.muli %25, %26 : vector<16x8xi32>
    %28 = arith.cmpi slt, %19, %27 : vector<16x8xi32>
    %29 = arith.andi %23, %28 : vector<16x8xi1>
    %30 = arith.extui %29 : vector<16x8xi1> to vector<16x8xi32>
    %31 = arith.sitofp %30 : vector<16x8xi32> to vector<16x8xf32>
    %cst_14 = arith.constant dense<0.000000e+00> : vector<16x64xf32>
    %32 = tpu.matmul %31, %17, %cst_14 {dimension_numbers = #tpu.dot_dimension_numbers<[1], [0], [0], [1], [0, 0, 1, 1], [], []>} : vector<16x8xf32>, vector<8x64xf32>, vector<16x64xf32> -> vector<16x64xf32>
    %33 = vector.extract_strided_slice %32 {offsets = [0, 0], sizes = [16, 32], strides = [1, 1]} : vector<16x64xf32> to vector<16x32xf32>
    %34 = vector.extract_strided_slice %32 {offsets = [0, 32], sizes = [16, 32], strides = [1, 1]} : vector<16x64xf32> to vector<16x32xf32>
    %cst_15 = arith.constant 5.000000e-01 : f32
    %35 = vector.broadcast %cst_15 : f32 to vector<16x32xf32>
    %36 = arith.mulf %35, %34 : vector<16x32xf32>
    %37 = math.exp %36 : vector<16x32xf32>
    %c0_16 = arith.constant 0 : index
    %c0_17 = arith.constant 0 : index
    %38 = vector.load %arg1[%c0_16, %c0_17] : memref<16x32xf32, #tpu.memory_space<vmem>>, vector<16x32xf32>
    %39 = arith.mulf %37, %38 : vector<16x32xf32>
    %40 = arith.addf %33, %39 : vector<16x32xf32>
    %c0_18 = arith.constant 0 : index
    %c0_19 = arith.constant 0 : index
    %41 = vector.load %arg5[%c0_18, %c0_19] : memref<16x32xf32, #tpu.memory_space<vmem>>, vector<16x32xf32>
    tpu.vector_store %arg5[%c0_18, %c0_19], %40 {strides = array<i32>} : memref<16x32xf32, #tpu.memory_space<vmem>>, vector<16x32xf32>,
    %c160 = arith.constant 160 : index
    %c0_20 = arith.constant 0 : index
    %42 = vector.load %arg2[%c160, %c0_20] : memref<224x64xf32, #tpu.memory_space<vmem>>, vector<32x32xf32>
    %c3 = arith.constant 3 : index
    %c0_21 = arith.constant 0 : index
    %43 = vector.load %arg3[%c3, %c0_21] : memref<5x64xf32, #tpu.memory_space<vmem>>, vector<1x32xf32>
    %cst_22 = arith.constant dense<0.000000e+00> : vector<16x32xf32>
    %44 = tpu.matmul %40, %42, %cst_22 {dimension_numbers = #tpu.dot_dimension_numbers<[1], [0], [0], [1], [0, 0, 1, 1], [], []>} : vector<16x32xf32>, vector<32x32xf32>, vector<16x32xf32> -> vector<16x32xf32>
    %45 = vector.broadcast %43 : vector<1x32xf32> to vector<16x32xf32>
    %46 = arith.addf %44, %45 : vector<16x32xf32>
    %47 = math.tanh %46 : vector<16x32xf32>
    %c160_23 = arith.constant 160 : index
    %c0_24 = arith.constant 0 : index
    %48 = vector.load %arg2[%c160_23, %c0_24] : memref<224x64xf32, #tpu.memory_space<vmem>>, vector<32x32xf32>
    %c3_25 = arith.constant 3 : index
    %c0_26 = arith.constant 0 : index
    %49 = vector.load %arg3[%c3_25, %c0_26] : memref<5x64xf32, #tpu.memory_space<vmem>>, vector<1x32xf32>
    %cst_27 = arith.constant dense<0.000000e+00> : vector<16x32xf32>
    %50 = tpu.matmul %47, %48, %cst_27 {dimension_numbers = #tpu.dot_dimension_numbers<[1], [0], [0], [1], [0, 0, 1, 1], [], []>} : vector<16x32xf32>, vector<32x32xf32>, vector<16x32xf32> -> vector<16x32xf32>
    %51 = vector.broadcast %49 : vector<1x32xf32> to vector<16x32xf32>
    %52 = arith.addf %50, %51 : vector<16x32xf32>
    %53 = math.tanh %52 : vector<16x32xf32>
    %c192 = arith.constant 192 : index
    %c0_28 = arith.constant 0 : index
    %54 = vector.load %arg2[%c192, %c0_28] : memref<224x64xf32, #tpu.memory_space<vmem>>, vector<32x32xf32>
    %c4 = arith.constant 4 : index
    %c0_29 = arith.constant 0 : index
    %55 = vector.load %arg3[%c4, %c0_29] : memref<5x64xf32, #tpu.memory_space<vmem>>, vector<1x32xf32>
    %cst_30 = arith.constant dense<0.000000e+00> : vector<16x32xf32>
    %56 = tpu.matmul %53, %54, %cst_30 {dimension_numbers = #tpu.dot_dimension_numbers<[1], [0], [0], [1], [0, 0, 1, 1], [], []>} : vector<16x32xf32>, vector<32x32xf32>, vector<16x32xf32> -> vector<16x32xf32>
    %57 = vector.broadcast %55 : vector<1x32xf32> to vector<16x32xf32>
    %58 = arith.addf %56, %57 : vector<16x32xf32>
    %c0_31 = arith.constant 0 : index
    %c0_32 = arith.constant 0 : index
    %59 = vector.load %arg6[%c0_31, %c0_32] : memref<16x32xf32, #tpu.memory_space<vmem>>, vector<16x32xf32>
    tpu.vector_store %arg6[%c0_31, %c0_32], %58 {strides = array<i32>} : memref<16x32xf32, #tpu.memory_space<vmem>>, vector<16x32xf32>,
    return
  }
}

</mosaic_0001>

<bundles_post_ra>
// kernel: vae_encoder2_forward.1
= control target key start
LH: loop header
LB: loop body
LE: loop exit
PB: predicated region body
PF: predicated region fallthrough
CT: control target
= control target key end

     0   :  { %v896_v1 = vmov 0.0   ;;  %vm897_vm0 = vmmov 0   ;;  %s1108_s0 = inlined_call_operand.vmem [shape: f32[8,32], index: 0, kind: input, shape index: {}]   ;;  %s1109_s1 = inlined_call_operand.vmem [shape: f32[16,32], index: 1, kind: input, shape index: {}]   ;;  %s1110_s2 = inlined_call_operand.vmem [shape: f32[224,64], index: 2, kind: input, shape index: {}]   ;;  %s1111_s3 = inlined_call_operand.vmem [shape: f32[5,64], index: 3, kind: input, shape index: {}]   ;;  %s1112_s4 = inlined_call_operand.vmem [shape: f32[8,64], index: 4, kind: output, shape index: {0}]   ;;  %s1113_s5 = inlined_call_operand.hbm [shape: f32[16,32], index: 5, kind: output, shape index: {1}]   ;;  %s1114_s6 = inlined_call_operand.vmem [shape: f32[16,32], index: 6, kind: output, shape index: {2}]  }
   0x1   :  { %v25_v0 = vld [vmem:[%s1110_s2 + $0x18] sm:$0xff]  ;;  %764 = vmatprep.subr.mxu0 %v896_v1  ;;  %v24_v2 = vld [vmem:[%s1110_s2 + $0x10] sm:$0xff]  ;;  %772 = vmatprep.mubr.msk.f32.mxu0 %vm897_vm0, %v896_v1 }
   0x2   :  { %765 = vmatpush3.msra.mxu0 %v25_v0  ;;  %775 = vmatprep.subr.mxu1 %v896_v1 }
   0x3   :  { %12 = vsyncpa [#allocation3], 0  ;;  %766 = vmatprep.subr.mxu0 %v896_v1  ;;  %v23_v3 = vld [vmem:[%s1110_s2 + $0x8] sm:$0xff]  ;;  %791 = vmatprep.mubr.msk.f32.mxu1 %vm897_vm0, %v896_v1  ;;  %v22_v4 = vld [vmem:[%s1110_s2] sm:$0xff]  ;;  %vm31_vm1 = vcmask 261120   ;;  %vm119_vm2 = vcmask 523264   ;;  %v281_v32 = vlaneseq }
   0x4   :  { %767 = vmatpush3.msra.mxu0 %v24_v2  ;;  %v21_v5 = vld [vmem:[%s1108_s0] sm:$0xff]  ;;  %v113_v6 = vld [vmem:[%s1110_s2 + $0x58] sm:$0xff]  ;;  %v112_v7 = vld [vmem:[%s1110_s2 + $0x50] sm:$0xff]  ;;  %vm299_vm8 = vcmask 64512   ;;  %s898_s19 = smov 32   ;;  %s899_s8 = smov 96  }
   0x5   :  { %768 = vmatprep.subr.mxu0 %v896_v1  ;;  %776 = vmatpush3.msra.mxu1 %v113_v6  ;;  %v111_v8 = vld [vmem:[%s1110_s2 + $0x48] sm:$0xff]  ;;  %v110_v9 = vld [vmem:[%s1110_s2 + $0x40] sm:$0xff]  ;;  %v109_v10 = vld [vmem:[%s1110_s2 + $0x38] sm:$0xff]  ;;  %v285_v33 = vand.u32 127, %v281_v32  ;;  %v282_v35 = vshrl.u32 %v281_v32, 7  ;;  %s900_s18 = smov [#allocation2]  }
   0x6   :  { %769 = vmatpush3.msra.mxu0 %v23_v3  ;;  %777 = vmatprep.subr.mxu1 %v896_v1  ;;  %v108_v11 = vld [vmem:[%s1110_s2 + $0x30] sm:$0xff]  ;;  %v107_v12 = vld [vmem:[%s1110_s2 + $0x28] sm:$0xff]  ;;  %v106_v13 = vld [vmem:[%s1110_s2 + $0x20] sm:$0xff] }
   0x7   :  { %770 = vmatprep.subr.mxu0 %v896_v1  ;;  %778 = vmatpush3.msra.mxu1 %v112_v7  ;;  %v702_v14 = vld [vmem:[%s1111_s3] ss:$0 sm:$0xff]  ;;  %v201_v19 = vld [vmem:[%s1110_s2 + $0x98] sm:$0xff]  ;;  %v200_v20 = vld [vmem:[%s1110_s2 + $0x90] sm:$0xff]  ;;  %v289_v34 = vadd.s32 1, %v285_v33  ;;  %v286_v36 = vmul.u32 2, %v285_v33 }
   0x8   :  { %771 = vmatpush3.msra.mxu0 %v22_v4  ;;  %779 = vmatprep.subr.mxu1 %v896_v1  ;;  %v199_v21 = vld [vmem:[%s1110_s2 + $0x88] sm:$0xff]  ;;  %v198_v22 = vld [vmem:[%s1110_s2 + $0x80] sm:$0xff]  ;;  %v197_v23 = vld [vmem:[%s1110_s2 + $0x78] sm:$0xff]  ;;  %v283_v38 = vadd.s32 8, %v282_v35 }
   0x9   :  { %773 = vmatmul.mubr.msk.f32.vlgmr.msra.gmra.mxu0 %vm31_vm1, %v21_v5  ;;  %794 = vmatprep.subr.mxu0 %v896_v1  ;;  %v196_v24 = vld [vmem:[%s1110_s2 + $0x70] sm:$0xff]  ;;  %v195_v25 = vld [vmem:[%s1110_s2 + $0x68] sm:$0xff]  ;;  %v194_v26 = vld [vmem:[%s1110_s2 + $0x60] sm:$0xff]  ;;  %v290_v37 = vmul.u32 2, %v289_v34  ;;  %vm287_vm3 = vcmp.ge.s32.totalorder %v282_v35, %v286_v36 }
   0xa   :  { %810 = vmatprep.mubr.msk.f32.mxu0 %vm897_vm0, %v896_v1  ;;  %780 = vmatpush3.msra.mxu1 %v111_v8  ;;  %v704_v27 = vld [vmem:[%s1111_s3 + $0x1] ss:$0 sm:$0xff]  ;;  %vm1036_vm6 = vcmp.ge.s32.totalorder %v283_v38, %v286_v36  ;;  %v388_v42 = vld [vmem:[%s1109_s1 + $0x8] sm:$0xff]  ;;  %v706_v43 = vld [vmem:[%s1111_s3 + $0x2] ss:$0 sm:$0xff] }
   0xb   :  { %781 = vmatprep.subr.mxu1 %v896_v1  ;;  %795 = vmatpush3.msra.mxu0 %v201_v19  ;;  %vm291_vm4 = vcmp.lt.s32.totalorder %v282_v35, %v290_v37  ;;  %vm292_vm7 = vcmp.lt.s32.totalorder %v283_v38, %v290_v37  ;;  %v387_v41 = vld [vmem:[%s1109_s1] sm:$0xff]  ;;  %v414_v48 = vld [vmem:[%s1110_s2 + $0xb8] sm:$0xff]  ;;  %v413_v55 = vld [vmem:[%s1110_s2 + $0xb0] sm:$0xff] }
   0xc   :  { %782 = vmatpush3.msra.mxu1 %v110_v9  ;;  %796 = vmatprep.subr.mxu0 %v896_v1  ;;  %vm293_vm5 = vmand %vm287_vm3, %vm291_vm4  ;;  %v412_v56 = vld [vmem:[%s1110_s2 + $0xa8] sm:$0xff]  ;;  %v411_v57 = vld [vmem:[%s1110_s2 + $0xa0] sm:$0xff] }
   0xd   :  { %783 = vmatprep.subr.mxu1 %v896_v1  ;;  %797 = vmatpush3.msra.mxu0 %v200_v20  ;;  %v708_v40 = vsel %vm293_vm5, 1.0, %v896_v1  ;;  %vm294_vm9 = vmand %vm1036_vm6, %vm292_vm7  ;;  %v712_v4 = vld [vmem:[%s1111_s3 + $0x3] ss:$0 sm:$0xff] }
   0xe   :  { %784 = vmatpush3.msra.mxu1 %v109_v10  ;;  %798 = vmatprep.subr.mxu0 %v896_v1  ;;  %v709_v47 = vsel %vm294_vm9, 1.0, %v896_v1 }
   0xf   :  { %785 = vmatprep.subr.mxu1 %v896_v1  ;;  %799 = vmatpush3.msra.mxu0 %v199_v21 }
  0x10   :  { %786 = vmatpush3.msra.mxu1 %v108_v11  ;;  %800 = vmatprep.subr.mxu0 %v896_v1  ;;  %v589_v11 = vld [vmem:[%s1110_s2 + $0xd8] sm:$0xff] }
  0x11   :  { %787 = vmatprep.subr.mxu1 %v896_v1  ;;  %801 = vmatpush3.msra.mxu0 %v198_v22 }
  0x12   :  { %788 = vmatpush3.msra.mxu1 %v107_v12  ;;  %802 = vmatprep.subr.mxu0 %v896_v1  ;;  %v588_v12 = vld [vmem:[%s1110_s2 + $0xd0] sm:$0xff] }
  0x13   :  { %789 = vmatprep.subr.mxu1 %v896_v1  ;;  %803 = vmatpush3.msra.mxu0 %v197_v23 }
  0x14   :  { %790 = vmatpush3.msra.mxu1 %v106_v13  ;;  %804 = vmatprep.subr.mxu0 %v896_v1  ;;  %v587_v13 = vld [vmem:[%s1110_s2 + $0xc8] sm:$0xff] }
  0x15   :  { %805 = vmatpush3.msra.mxu0 %v196_v24  ;;  %391 = vrot.lane.b32.xlu0 %v387_v41, %s898_s19 }
  0x16   :  { %806 = vmatprep.subr.mxu0 %v896_v1 }
  0x17   :  { %807 = vmatpush3.msra.mxu0 %v195_v25 }
  0x18   :  { %808 = vmatprep.subr.mxu0 %v896_v1 }
  0x19   :  { %809 = vmatpush3.msra.mxu0 %v194_v26  ;;  %393 = vrot.lane.b32.xlu0 %v388_v42, %s898_s19  ;;  %s685_s19 = sshll.u32 %s900_s18, 4  ;;  %s686_s19 = int_to_ptr.vmem [resolvable:$true] %s685_s19 }
  0x1a   :  { %829 = vmatprep.subr.mxu0 %v414_v48  ;;  %p879_p1 = scmp.lt.s32.totalorder %s686_s19, %s686_s19 }
  0x87   :  { %v392_v58 = vpop.permute.xlu0 %391 }
  0x8b   :  { %v394_v62 = vpop.permute.xlu0 %393 }
  0xc9   :  { %v101_v15 = vpop.f32.mrf.mxu0 }
  0xca   :  { %v102_v16 = vadd.f32 %v702_v14, %v101_v15  ;;  %v586_v14 = vld [vmem:[%s1110_s2 + $0xc0] sm:$0xff]  ;;  %s874_s2 = scalar_lea.vmem %s686_s19, 256 }
  0xcb   :  { %v774_v17 = vpop.f32.mrf.mxu0  ;;  %p875_p0 = scmp.ne.s32.totalorder %s686_s19, %s874_s2  ;;  %p880_p2 = scmp.lt.s32.totalorder %s874_s2, %s874_s2 }
  0xcc   :  { %858 = vtanh.f32 %v102_v16 }
  0xcd   :  { %p881_p3 = por %p880_p2, %p879_p1 }
  0xcf   :  { %p882_p4 = pnand %p881_p3, %p875_p0 }
  0xd9   :  { %v859_v18 = vpop.eup %858 }
  0xda   :  { %792 = vmatmul.mubr.msk.f32.vlgmr.msra.gmra.mxu1 %vm119_vm2, %v859_v18 }
  0xdb   :  { %815 = vmatprep.mubr.msk.f32.mxu1 %vm299_vm8, %v708_v40 }
 0x19a   :  { %v189_v28 = vpop.f32.mrf.mxu1 }
 0x19b   :  { %v190_v29 = vadd.f32 %v704_v27, %v189_v28 }
 0x19c   :  { %v793_v30 = vpop.f32.mrf.mxu1 }
 0x19d   :  { %860 = vtanh.f32 %v190_v29 }
 0x1aa   :  { %v861_v31 = vpop.eup %860 }
 0x1ab   :  { %811 = vmatmul.mubr.msk.f32.vlgmr.msra.gmra.mxu0 %vm119_vm2, %v861_v31 }
 0x1ac   :  { %830 = vmatpush3.msra.mxu0 %v414_v48 }
 0x1ad   :  { %831 = vmatprep.subr.mxu0 %v413_v55 }
 0x1ae   :  { %832 = vmatpush3.msra.mxu0 %v413_v55 }
 0x1af   :  { %833 = vmatprep.subr.mxu0 %v412_v56 }
 0x1b0   :  { %834 = vmatpush3.msra.mxu0 %v412_v56 }
 0x1b1   :  { %835 = vmatprep.subr.mxu0 %v411_v57 }
 0x1b2   :  { %836 = vmatpush3.msra.mxu0 %v411_v57 }
 0x26b   :  { %v276_v44 = vpop.f32.mrf.mxu0 }
 0x26c   :  { %v277_v45 = vadd.f32 %v706_v43, %v276_v44 }
 0x26d   :  { %v812_v46 = vpop.f32.mrf.mxu0 }
 0x26e   :  { %280 = vst.msk [vmem:[%s1112_s4] sm:$0xff] %vm119_vm2, %v277_v45  ;;  %813 = vmatprep.subr.mxu1 %v277_v45 }
 0x26f   :  { %814 = vmatpush3.msra.mxu1 %v277_v45 }
 0x270   :  { %816 = vmatmul.mubr.msk.f32.vlgmr.msra.gmra.mxu1 %vm299_vm8, %v709_v47  ;;  %818 = vmatprep.subr.mxu1 %v414_v48 }
 0x271   :  { %819 = vmatpush3.msra.mxu1 %v414_v48 }
 0x272   :  { %820 = vmatprep.subr.mxu1 %v413_v55 }
 0x273   :  { %821 = vmatpush3.msra.mxu1 %v413_v55 }
 0x274   :  { %822 = vmatprep.subr.mxu1 %v412_v56 }
 0x275   :  { %823 = vmatpush3.msra.mxu1 %v412_v56 }
 0x276   :  { %824 = vmatprep.subr.mxu1 %v411_v57 }
 0x277   :  { %825 = vmatpush3.msra.mxu1 %v411_v57 }
 0x278   :  { %840 = vmatprep.subr.mxu1 %v589_v11 }
 0x330   :  { %v817_v49 = vpop.f32.mrf.mxu1 }
 0x331   :  { %v382_v50 = vmul.f32 0.5, %v817_v49 }
 0x332   :  { %v372_v51 = vpop.f32.mrf.mxu1 }
 0x333   :  { %v381_v52 = vmul.f32 0.5, %v372_v51  ;;  %v385_v53 = vmul.f32 1.442695, %v382_v50 }
 0x335   :  { %v383_v54 = vmul.f32 1.442695, %v381_v52 }
 0x337   :  { %862 = vpow2.f32 %v383_v54 }
 0x338   :  { %864 = vpow2.f32 %v385_v53 }
 0x344   :  { %v863_v59 = vpop.eup %862 }
 0x345   :  { %v397_v60 = vmul.f32 %v863_v59, %v392_v58  ;;  %v865_v61 = vpop.eup %864 }
 0x346   :  { %v398_v63 = vmul.f32 %v865_v61, %v394_v62 }
 0x347   :  { %401 = vrot.lane.b32.xlu1 %v397_v60, %s899_s8 }
 0x34b   :  { %403 = vrot.lane.b32.xlu1 %v398_v63, %s899_s8 }
 0x3b9   :  { %v402_v0 = vpop.permute.xlu1 %401 }
 0x3ba   :  { %v407_v1 = vadd.f32 %v402_v0, %v372_v51 }
 0x3bc   :  { %409 = vst.msk [vmem:[#allocation2] sm:$0xff] %vm31_vm1, %v407_v1  ;;  %826 = vmatprep.mubr.msk.f32.mxu1 %vm31_vm1, %v407_v1 }
 0x3bd   :  { %v404_v2 = vpop.permute.xlu1 %403 }
 0x3be   :  { %v408_v3 = vadd.f32 %v817_v49, %v404_v2 }
 0x3c0   :  { %410 = vst.msk [vmem:[#allocation2 + $0x8] sm:$0xff] %vm31_vm1, %v408_v3  ;;  %827 = vmatmul.mubr.msk.f32.vlgmr.msra.gmra.mxu1 %vm31_vm1, %v408_v3 }
 0x3c1   :  { %841 = vmatpush3.msra.mxu1 %v589_v11 }
 0x3c2   :  { %842 = vmatprep.subr.mxu1 %v588_v12 }
 0x3c3   :  { %843 = vmatpush3.msra.mxu1 %v588_v12 }
 0x3c4   :  { %844 = vmatprep.subr.mxu1 %v587_v13 }
 0x3c5   :  { %845 = vmatpush3.msra.mxu1 %v587_v13 }
 0x3c6   :  { %846 = vmatprep.subr.mxu1 %v586_v14 }
 0x3c7   :  { %847 = vmatpush3.msra.mxu1 %v586_v14 }
 0x480   :  { %v828_v5 = vpop.f32.mrf.mxu1 }
 0x481   :  { %v498_v6 = vadd.f32 %v828_v5, %v712_v4 }
 0x482   :  { %v492_v7 = vpop.f32.mrf.mxu1 }
 0x483   :  { %v493_v8 = vadd.f32 %v712_v4, %v492_v7 }
 0x485   :  { %866 = vtanh.f32 %v493_v8 }
 0x486   :  { %868 = vtanh.f32 %v498_v6 }
 0x492   :  { %v867_v9 = vpop.eup %866 }
 0x493   :  { %v869_v10 = vpop.eup %868  ;;  %837 = vmatprep.mubr.msk.f32.mxu0 %vm31_vm1, %v867_v9 }
 0x494   :  { %838 = vmatmul.mubr.msk.f32.vlgmr.msra.gmra.mxu0 %vm31_vm1, %v869_v10 }
 0x554   :  { %v839_v15 = vpop.f32.mrf.mxu0 }
 0x555   :  { %v581_v16 = vadd.f32 %v839_v15, %v712_v4 }
 0x556   :  { %v575_v17 = vpop.f32.mrf.mxu0 }
 0x557   :  { %v576_v18 = vadd.f32 %v712_v4, %v575_v17 }
 0x559   :  { %870 = vtanh.f32 %v576_v18 }
 0x55a   :  { %872 = vtanh.f32 %v581_v16 }
 0x566   :  { %v871_v19 = vpop.eup %870 }
 0x567   :  { %v873_v20 = vpop.eup %872  ;;  %848 = vmatprep.mubr.msk.f32.mxu1 %vm31_vm1, %v871_v19 }
 0x568   :  { %849 = vmatmul.mubr.msk.f32.vlgmr.msra.gmra.mxu1 %vm31_vm1, %v873_v20 }
 0x569   :  { %885 = shalt.err (!%p882_p4)
}
 0x56a   :  { %s901_s20 = smov 128   ;;  %s902_s21 = smov 8   ;;  %v717_v21 = vld [vmem:[%s1111_s3 + $0x4] ss:$0 sm:$0xff] }
 0x56b   :  { %691 = dma.vmem_to_hbm [thread:$0]  %s686_s19, 256, %s1113_s5, [#allocation3], %s901_s20, %s901_s20, %s902_s21  }
 0x628   :  { %v850_v22 = vpop.f32.mrf.mxu1 }
 0x629   :  { %v673_v23 = vadd.f32 %v850_v22, %v717_v21 }
 0x62a   :  { %v667_v24 = vpop.f32.mrf.mxu1 }
 0x62b   :  { %677 = vst.msk [vmem:[%s1114_s6 + $0x8] sm:$0xff] %vm31_vm1, %v673_v23  ;;  %v668_v25 = vadd.f32 %v717_v21, %v667_v24 }
 0x62d   :  { %676 = vst.msk [vmem:[%s1114_s6] sm:$0xff] %vm31_vm1, %v668_v25 }
 0x62e   :  { %894 = dma.done.wait [#allocation3], 256  }
 0x62f   :  { %895 = vsyncadd [#allocation3], 4294967040 }
 0x630   :  { %701 = vsyncpa [#allocation3], 1 }

</bundles_post_ra>
